<compile_context>
chip_gen: v7x
topology: tpu7x:2x2x1
jax: 0.10.0
libtpu: 0.0.40
codegen_flags: <defaults>
</compile_context>

<pallas_src>
import functools
import math

import jax
import jax.numpy as jnp
from jax import lax
from jax.experimental import pallas as pl
from jax.experimental.pallas import tpu as pltpu


def self_attention_kernel(q_ref, out_ref, attn_ref, *, inv_temp, tq):
    # q_ref   : (1, S, D)  all rows of this batch element (queries/keys/values)
    # out_ref : (1, TQ, D)
    # attn_ref: (1, TQ, S)
    i = pl.program_id(1)
    start = pl.multiple_of(i * tq, tq)

    q_all = q_ref[0]                        # (S, D), resident in VMEM
    q_blk = q_ref[0, pl.ds(start, tq), :]   # (TQ, D), free slice of same slab

    # scores[r, c] = q_blk[r] . q_all[c]; contract D on both operands, so no
    # transpose is materialized in-kernel.  HIGHEST precision => true f32 like
    # torch.bmm, keeping the exact ==0.0 mask semantics trustworthy.
    scores = lax.dot_general(
        q_blk, q_all,
        dimension_numbers=(((1,), (1,)), ((), ())),
        preferred_element_type=jnp.float32,
        precision=lax.Precision.HIGHEST,
    )  # (TQ, S) f32

    # Mask computed on the RAW bmm result (attn.eq(0.0) in the module); the
    # 1/temperature scale is a multiply fused into the same select (one fewer
    # full-tile VPU pass than divide-then-where).
    zero_mask = scores == 0.0
    scores = jnp.where(zero_mask, -jnp.inf, scores * inv_temp)

    # Softmax over keys, reproducing PyTorch's NaN -> 0 for fully-masked rows
    # without relying on NaN propagation: dead rows give e == 0 everywhere and
    # a denominator forced to 1, so their attn rows come out exactly 0.
    row_max = jnp.max(scores, axis=-1, keepdims=True)    # (TQ, 1)
    row_dead = row_max == -jnp.inf
    safe_max = jnp.where(row_dead, 0.0, row_max)
    e = jnp.exp(scores - safe_max)                        # dead rows: all zeros
    denom = jnp.sum(e, axis=-1, keepdims=True)            # live rows: >= 1
    inv = pl.reciprocal(jnp.where(row_dead, 1.0, denom))  # (TQ, 1), exact
    attn = e * inv                                        # dead rows stay 0

    # TODO(synk): nn.Dropout(attn_dropout) is identity in eval mode; training
    # time stochastic dropout of the attention weights is not applied here.

    out = jnp.dot(attn, q_all,
                  preferred_element_type=jnp.float32,
                  precision=lax.Precision.HIGHEST)        # (TQ, D)

    attn_ref[0] = attn.astype(attn_ref.dtype)
    out_ref[0] = out.astype(out_ref.dtype)


def _vmem_capacity_bytes() -> int:
    try:
        return int(pltpu.get_tpu_info().vmem_capacity_bytes)
    except Exception:
        return 64 * 1024 * 1024  # v7x-safe fallback


def _step_vmem_bytes(tq, s, d, attn_bytes, out_bytes):
    # Double-buffered DMA tiles (attn out, out, q slab) plus ~4 live (TQ, S)
    # f32 temporaries (scores / mask / e / attn) the compiler keeps in VMEM.
    dma = 2 * (tq * s * attn_bytes + tq * d * out_bytes + s * d * 4)
    tmps = 4 * tq * s * 4
    return dma + tmps


def _choose_query_tile(s, d, attn_bytes, out_bytes, vmem_cap):
    budget = vmem_cap // 2  # headroom for compiler scratch / spills
    fitting = [c for c in (512, 256, 128, 64, 32, 16, 8)
               if s % c == 0
               and _step_vmem_bytes(c, s, d, attn_bytes, out_bytes) <= budget]
    if fitting:
        return fitting[0]          # largest lane/sublane-friendly tile that fits
    divisors = [c for c in (512, 256, 128, 64, 32, 16, 8) if s % c == 0]
    if divisors:
        return divisors[-1]        # best effort for very large S
    return s                       # tiny/odd S: full-extent block is always legal


def self_attention(q, temperature, *, attn_dtype=None):
    """q: (B, S, D). Returns (output, attn) matching the PyTorch module (eval
    mode). Pass attn_dtype=jnp.bfloat16 to halve the dominant attn writeback
    (softmax math stays in f32)."""
    B, S, D = q.shape
    attn_dtype = q.dtype if attn_dtype is None else jnp.dtype(attn_dtype)
    out_dtype = q.dtype
    attn_bytes = jnp.dtype(attn_dtype).itemsize
    out_bytes = jnp.dtype(out_dtype).itemsize

    vmem_cap = _vmem_capacity_bytes()
    tq = _choose_query_tile(S, D, attn_bytes, out_bytes, vmem_cap)
    n_blocks = S // tq

    step_bytes = _step_vmem_bytes(tq, S, D, attn_bytes, out_bytes)
    vmem_limit = max(32 * 1024 * 1024, int(1.25 * step_bytes))
    vmem_limit = max(min(vmem_limit, int(0.75 * vmem_cap)), 16 * 1024 * 1024)

    kernel = functools.partial(
        self_attention_kernel, inv_temp=1.0 / float(temperature), tq=tq)

    cost = pl.CostEstimate(
        flops=4 * B * S * S * D,
        transcendentals=B * S * S,
        bytes_accessed=B * S * D * (4 + out_bytes) + B * S * S * attn_bytes,
    )

    out, attn = pl.pallas_call(
        kernel,
        out_shape=(
            jax.ShapeDtypeStruct((B, S, D), out_dtype),
            jax.ShapeDtypeStruct((B, S, S), attn_dtype),
        ),
        grid=(B, n_blocks),
        in_specs=[
            # Full per-batch q slab; invariant in the query-block axis i, so it
            # is DMA'd once per batch element and queries are sliced in-kernel.
            pl.BlockSpec((1, S, D), lambda b, i: (b, 0, 0)),
        ],
        out_specs=(
            pl.BlockSpec((1, tq, D), lambda b, i: (b, i, 0)),
            pl.BlockSpec((1, tq, S), lambda b, i: (b, i, 0)),
        ),
        compiler_params=pltpu.CompilerParams(
            dimension_semantics=("parallel", "parallel"),
            vmem_limit_bytes=vmem_limit,
        ),
        cost_estimate=cost,
    )(q)
    return out, attn


def reference(q, temperature):
    # Literal translation of the PyTorch forward (f32, HIGHEST-precision matmuls).
    attn = jnp.einsum("bid,bjd->bij", q, q, precision=lax.Precision.HIGHEST)
    mask = attn == 0.0
    attn = attn / temperature
    attn = jnp.where(mask, -jnp.inf, attn)
    m = jnp.max(attn, axis=-1, keepdims=True)
    e = jnp.exp(attn - m)
    attn = e / jnp.sum(e, axis=-1, keepdims=True)
    attn = jnp.where(attn != attn, 0.0, attn)   # NaN -> 0 (fully-masked rows)
    out = jnp.einsum("bij,bjd->bid", attn, q, precision=lax.Precision.HIGHEST)
    return out, attn


if __name__ == "__main__":
    B, S, D = 2, 8, 32
    temperature = math.sqrt(D)

    key = jax.random.PRNGKey(0)
    q = jax.random.normal(key, (B, S, D), dtype=jnp.float32)
    # Zero one row (a "padded token"): its q.q^T row/column is exactly 0, which
    # exercises the eq(0) -> -inf -> NaN -> 0 masking path of the module.
    q = q.at[1, S - 1, :].set(0.0)

    out, attn = self_attention(q, temperature)
    out, attn = jax.block_until_ready((out, attn))

    ref_out, ref_attn = reference(q, temperature)
    assert out.shape == (B, S, D) and attn.shape == (B, S, S)
    assert bool(jnp.all(jnp.isfinite(out))) and bool(jnp.all(jnp.isfinite(attn)))
    assert jnp.allclose(attn, ref_attn, atol=1e-5, rtol=1e-5)
    assert jnp.allclose(out, ref_out, atol=1e-5, rtol=1e-5)
    print("KERNEL_OK")
</pallas_src>

<mosaic_0001>
module attributes {stable_mosaic.version = 11 : i64} {
  func.func @self_attention_kernel(%arg0: i32, %arg1: i32, %arg2: memref<1x8x32xf32, #tpu.memory_space<vmem>>, %arg3: memref<1x8x32xf32, #tpu.memory_space<vmem>>, %arg4: memref<1x8x8xf32, #tpu.memory_space<vmem>>) attributes {dimension_semantics = [#tpu.dimension_semantics<parallel>, #tpu.dimension_semantics<parallel>], iteration_bounds = array<i64: 2, 1>, scalar_prefetch = 0 : i64, scratch_operands = 0 : i64, tpu.core_type = #tpu.core_type<tc>, window_params = [{transform_indices = @transform_0, window_bounds = array<i64: 1, 8, 32>}, {transform_indices = @transform_1, window_bounds = array<i64: 1, 8, 32>}, {transform_indices = @transform_2, window_bounds = array<i64: 1, 8, 8>}]} {
    %c8_i32 = arith.constant 8 : i32
    %0 = arith.muli %arg1, %c8_i32 : i32
    %1 = tpu.assume_multiple %0, 8 : i32
    %c0 = arith.constant 0 : index
    %c0_0 = arith.constant 0 : index
    %c0_1 = arith.constant 0 : index
    %2 = vector.load %arg2[%c0, %c0_0, %c0_1] : memref<1x8x32xf32, #tpu.memory_space<vmem>>, vector<1x8x32xf32>
    %3 = vector.shape_cast %2 : vector<1x8x32xf32> to vector<8x32xf32>
    %c0_2 = arith.constant 0 : index
    %4 = arith.index_cast %1 : i32 to index
    %c0_3 = arith.constant 0 : index
    %5 = vector.load %arg2[%c0_2, %4, %c0_3] : memref<1x8x32xf32, #tpu.memory_space<vmem>>, vector<1x8x32xf32>
    %6 = vector.shape_cast %5 : vector<1x8x32xf32> to vector<8x32xf32>
    %cst = arith.constant dense<0.000000e+00> : vector<8x8xf32>
    %7 = tpu.matmul %6, %3, %cst {dimension_numbers = #tpu.dot_dimension_numbers<[1], [1], [0], [0], [0, 0, 1, 0], [], []>, precision = #tpu.contract_precision<fp32>} : vector<8x32xf32>, vector<8x32xf32>, vector<8x8xf32> -> vector<8x8xf32>
    %cst_4 = arith.constant 0.000000e+00 : f32
    %8 = vector.broadcast %cst_4 : f32 to vector<8x8xf32>
    %9 = arith.cmpf oeq, %7, %8 : vector<8x8xf32>
    %cst_5 = arith.constant 0.176776692 : f32
    %10 = vector.broadcast %cst_5 : f32 to vector<8x8xf32>
    %11 = arith.mulf %7, %10 : vector<8x8xf32>
    %cst_6 = arith.constant 0xFF800000 : f32
    %12 = vector.broadcast %cst_6 : f32 to vector<8x8xf32>
    %13 = arith.select %9, %12, %11 : vector<8x8xi1>, vector<8x8xf32>
    %cst_7 = arith.constant dense<0xFF800000> : vector<8xf32>
    %14 = vector.multi_reduction <maximumf>, %13, %cst_7 [1] : vector<8x8xf32> to vector<8xf32>
    %15 = vector.shape_cast %14 : vector<8xf32> to vector<8x1xf32>
    %cst_8 = arith.constant 0xFF800000 : f32
    %16 = vector.broadcast %cst_8 : f32 to vector<8x1xf32>
    %17 = arith.cmpf oeq, %15, %16 : vector<8x1xf32>
    %cst_9 = arith.constant 0.000000e+00 : f32
    %18 = vector.broadcast %cst_9 : f32 to vector<8x1xf32>
    %19 = arith.select %17, %18, %15 : vector<8x1xi1>, vector<8x1xf32>
    %20 = vector.broadcast %19 : vector<8x1xf32> to vector<8x8xf32>
    %21 = arith.subf %13, %20 : vector<8x8xf32>
    %22 = math.exp %21 : vector<8x8xf32>
    %cst_10 = arith.constant dense<0.000000e+00> : vector<8xf32>
    %23 = vector.multi_reduction <add>, %22, %cst_10 [1] : vector<8x8xf32> to vector<8xf32>
    %24 = vector.shape_cast %23 : vector<8xf32> to vector<8x1xf32>
    %cst_11 = arith.constant 1.000000e+00 : f32
    %25 = vector.broadcast %cst_11 : f32 to vector<8x1xf32>
    %26 = arith.select %17, %25, %24 : vector<8x1xi1>, vector<8x1xf32>
    %27 = tpu.reciprocal %26 : vector<8x1xf32> -> vector<8x1xf32>
    %28 = vector.broadcast %27 : vector<8x1xf32> to vector<8x8xf32>
    %29 = arith.mulf %22, %28 : vector<8x8xf32>
    %cst_12 = arith.constant dense<0.000000e+00> : vector<8x32xf32>
    %30 = tpu.matmul %29, %3, %cst_12 {dimension_numbers = #tpu.dot_dimension_numbers<[1], [0], [0], [1], [0, 0, 1, 1], [], []>, precision = #tpu.contract_precision<fp32>} : vector<8x8xf32>, vector<8x32xf32>, vector<8x32xf32> -> vector<8x32xf32>
    %c0_13 = arith.constant 0 : index
    %c0_14 = arith.constant 0 : index
    %c0_15 = arith.constant 0 : index
    %31 = vector.load %arg4[%c0_13, %c0_14, %c0_15] : memref<1x8x8xf32, #tpu.memory_space<vmem>>, vector<1x8x8xf32>
    %32 = vector.shape_cast %31 : vector<1x8x8xf32> to vector<8x8xf32>
    %33 = vector.shape_cast %29 : vector<8x8xf32> to vector<1x8x8xf32>
    tpu.vector_store %arg4[%c0_13, %c0_14, %c0_15], %33 {strides = array<i32>} : memref<1x8x8xf32, #tpu.memory_space<vmem>>, vector<1x8x8xf32>,
    %c0_16 = arith.constant 0 : index
    %c0_17 = arith.constant 0 : index
    %c0_18 = arith.constant 0 : index
    %34 = vector.load %arg3[%c0_16, %c0_17, %c0_18] : memref<1x8x32xf32, #tpu.memory_space<vmem>>, vector<1x8x32xf32>
    %35 = vector.shape_cast %34 : vector<1x8x32xf32> to vector<8x32xf32>
    %36 = vector.shape_cast %30 : vector<8x32xf32> to vector<1x8x32xf32>
    tpu.vector_store %arg3[%c0_16, %c0_17, %c0_18], %36 {strides = array<i32>} : memref<1x8x32xf32, #tpu.memory_space<vmem>>, vector<1x8x32xf32>,
    return
  }
  func.func @transform_0(%arg0: i32, %arg1: i32) -> (i32, i32, i32) {
    %c0_i32 = arith.constant 0 : i32
    %c0_i32_0 = arith.constant 0 : i32
    %c0_i32_1 = arith.constant 0 : i32
    return %arg0, %c0_i32, %c0_i32_0 : i32, i32, i32
  }
  func.func @transform_1(%arg0: i32, %arg1: i32) -> (i32, i32, i32) {
    %c0_i32 = arith.constant 0 : i32
    %c0_i32_0 = arith.constant 0 : i32
    return %arg0, %arg1, %c0_i32 : i32, i32, i32
  }
  func.func @transform_2(%arg0: i32, %arg1: i32) -> (i32, i32, i32) {
    %c0_i32 = arith.constant 0 : i32
    %c0_i32_0 = arith.constant 0 : i32
    return %arg0, %arg1, %c0_i32 : i32, i32, i32
  }
}

</mosaic_0001>

<bundles_post_ra>
// kernel: tpu_custom_call.1
= control target key start
LH: loop header
LB: loop body
LE: loop exit
PB: predicated region body
PF: predicated region fallthrough
CT: control target
= control target key end

     0   :  { %8 = vsyncpa [#allocation3], 0  ;;  %s1869_s0 = inlined_call_operand.hbm [shape: f32[2,8,32], index: 0, kind: input, shape index: {}]   ;;  %s1870_s1 = inlined_call_operand.hbm [shape: f32[2,8,32], index: 1, kind: output, shape index: {0}]   ;;  %s1871_s2 = inlined_call_operand.hbm [shape: f32[2,8,8], index: 2, kind: output, shape index: {1}]  }
   0x1   :  { %10 = vsyncpa [#allocation3 + $0x1], 0 }
   0x2   :  { %11 = vsyncpa [#allocation4], 0 }
   0x3   :  { %13 = vsyncpa [#allocation4 + $0x1], 0 }
   0x4   :  { %14 = vsyncpa [#allocation7], 0 }
   0x5   :  { %16 = vsyncpa [#allocation7 + $0x1], 0  ;;  %s1619_s9 = smov 0   ;;  %s1621_s10 = smov 0  }
   0x6   :  { %s1623_s11 = smov 0   ;;  %s1625_s12 = smov 0  }
   0x7   :  { %s1627_s13 = smov 0   ;;  %s1629_s14 = smov 0  }
   0x8 LB: > { %s1260_s15 = sadd.s32 4294967295, %s1597_s14   ;;  %s1261_s16 = sadd.s32 4294967294, %s1597_s14   ;;  %s1597_s14 = sphi %s1629_s14, %s22_s14   ;;  %s1593_s13 = sphi %s1627_s13, %s1887_s13   ;;  %s1589_s12 = sphi %s1625_s12, %s1886_s12   ;;  %s1585_s11 = sphi %s1623_s11, %s1885_s11   ;;  %s1581_s10 = sphi %s1621_s10, %s1884_s10   ;;  %s1577_s9 = sphi %s1619_s9, %s1883_s9  }
   0x9   : > { %s34_s17 = sadd.s32 1, %s1593_s13  ;;  %s41_s18 = sadd.s32 1, %s1585_s11 }
   0xa   : > { %p36_p0 = scmp.ge.s32.totalorder %s34_s17, 2  ;;  %p48_p1 = scmp.ne.s32.totalorder %s1585_s11, %s1581_s10 }
   0xb   : > { %p49_p2 = scmp.eq.s32.totalorder %s1597_s14, 0  ;;  %p54_p3 = scmp.ne.s32.totalorder %s1581_s10, %s1577_s9 }
   0xc   : > { %s1889_s17 = smov (%p36_p0, %s34_s17), 0  ;;  %p55_p5 = scmp.eq.s32.totalorder %s1260_s15, 0 }
   0xd   : > { %p1660_p4 = por %p49_p2, %p48_p1  ;;  %s38_s20 = ssub.s32 %s1593_s13, %s1889_s17 }
   0xe   : > { %p80_p6 = scmp.eq.s32.totalorder %s1260_s15, 1  ;;  %p39_p7 = scmp.eq.s32.totalorder %s38_s20, 0 }
   0xf   : > { %p1666_p8 = por %p55_p5, %p54_p3  ;;  %p86_p10 = scmp.eq.s32.totalorder %s1261_s16, 1 }
  0x10   : > { %p1670_p9 = por %p80_p6, %p48_p1  ;;  %p1397_p13 = scmp.lt.s32.totalorder %s1597_s14, 2 }
  0x11   : > { %s1675_s23 = scalar_select %p39_p7, %s1585_s11, %s41_s18  }
  0x12   : > { %s1875_s22 = scalar_select %p1670_p9, 1, 0 }
  0x13   : > { %p1677_p11 = por %p86_p10, %p54_p3  ;;  %s134_s25 = sand.u32 1, %s1585_s11  }
  0x14   : > { %s1264_s26 = sshll.u32 %s134_s25, 3  ;;  %s1265_s27 = sshll.u32 %s1593_s13, 7 }
  0x15   : > { %s1876_s24 = scalar_select %p1677_p11, 1, 0 }
  0x16   : > { %s1688_s30 = scalar_lea.hbm %s1869_s0, %s1265_s27  ;;  %s138_s3 = scalar_lea.vmem [#allocation2], %s1264_s26 }
  0x17   : > { %s145_s4 = sshll.u32 %s138_s3, 4  ;;  %p1694_p0 = pnand %p1397_p13, %p1660_p4  ;;  %s1690_s4 = int_to_ptr.vmem [resolvable:$true] %s145_s4 }
  0x18   : > { %s135_s6 = scalar_lea.sflag [#allocation3], %s134_s25  ;;  %s1453_s7 = scalar_lea.hbm %s1688_s30, 128 }
  0x19   : > { %p1454_p3 = scmp.ne.s32.totalorder %s1688_s30, %s1453_s7  ;;  %p1455_p5 = pneg %p1694_p0 }
  0x1a   : > { %s1458_s16 = scalar_lea.hbm %s1869_s0, 256  ;;  %p1459_p4 = scmp.lt.u32.totalorder %s1688_s30, %s1869_s0 }
  0x1b   : > { %p1456_p6 = pnand %p1455_p5, %p1454_p3  ;;  %p1460_p10 = scmp.lt.u32.totalorder %s1458_s16, %s1453_s7 }
  0x1c   : > { %p1462_p12 = scmp.lt.u32.totalorder %s1453_s7, %s1688_s30 }
  0x1d   : > { %p1457_p7 = pneg %p1456_p6  ;;  %p1461_p13 = por %p1460_p10, %p1459_p4 }
  0x1f   : > { %p1463_p1 = por %p1462_p12, %p1461_p13 }
  0x21   : > { %p1464_p2 = pnand %p1463_p1, %p1457_p7 }
  0x23   : > { %1467 = shalt.err (!%p1464_p2)
}
  0x24   : > { %s1468_s20 = scalar_lea.vmem %s1690_s4, 128  ;;  %s1599_s25 = smov [#allocation2]  }
  0x25   : > { %p1469_p3 = scmp.ne.s32.totalorder %s1690_s4, %s1468_s20  ;;  %s1473_s26 = sshll.u32 %s1599_s25, 4  ;;  %s1474_s26 = int_to_ptr.vmem [resolvable:$false] %s1473_s26 }
  0x26   : > { %s1475_s27 = scalar_lea.vmem %s1474_s26, 256  ;;  %p1476_p9 = scmp.lt.s32.totalorder %s1690_s4, %s1474_s26 }
  0x27   : > { %p1471_p6 = pnand %p1469_p3, %p1455_p5  ;;  %p1477_p4 = scmp.lt.s32.totalorder %s1475_s27, %s1468_s20 }
  0x29   : > { %p1472_p11 = pneg %p1471_p6  ;;  %p1478_p10 = por %p1477_p4, %p1476_p9 }
  0x2b   : > { %p1479_p12 = pnand %p1478_p10, %p1472_p11 }
  0x2d   : > { %1482 = shalt.err (!%p1479_p12)
}
  0x2e   : > { %1389 = dma.hbm_to_vmem [thread:$0]  (!%p1694_p0), %s1688_s30, 128, %s1690_s4, %s135_s6  }
  0x2f   : > { %p1878_p1 = scmp.lt.s32.totalorder %s1597_s14, 3  ;;  %p1879_p2 = scmp.ge.s32.totalorder %s1597_s14, 1 }
  0x31   : > { %p151_p5 = pnand %p1879_p2, %p1878_p1 }
  0x32   : > { %s1730_s28 = sand.u32 (!%p151_p5), 1, %s1581_s10  }
  0x33   : > { %154 = sbr.rel (%p151_p5) target bundleno = 920 (0x398), region = 24  ;;  %s1733_s29 = sshll.u32 (!%p151_p5), %s1730_s28, 3 }
  0x34   : > { %s157_s3 = scalar_lea.sflag (!%p151_p5), [#allocation3], %s1730_s28  ;;  %s160_s5 = scalar_lea.vmem (!%p151_p5), [#allocation2], %s1733_s29 }
  0x3a   : > { %1564 = dma.done.wait (%p1666_p8), %s157_s3, 128  }
  0x3b   : > { %1566 = vsyncadd (%p1666_p8), %s157_s3, 4294967168  ;;  %v1600_v0 = vmov 0.0   ;;  %vm1601_vm0 = vmmov 0   ;;  %vm190_vm1 = vcmask 261120   ;;  %v187_v1 = vld [vmem:[%s160_s5] sm:$0xff]  ;;  %vm646_vm3 = vcmask 64512  }
  0x3c   : > { %1300 = vmatprep.subr.mxu0 %v1600_v0  ;;  %1302 = vmatprep.mubr.msk.f32.mxu0 %vm1601_vm0, %v1600_v0  ;;  %v195_v2 = vsel %vm190_vm1, %v187_v1, 0  ;;  %v665_v19 = vand.u32 4294901760, %v187_v1  ;;  %s185_s21 = scalar_lea.vmem [#allocation6], %s1733_s29  ;;  %s1272_s30 = sshll.u32 %s1589_s12, 7 }
  0x3d   : > { %1330 = vmatprep.subr.mxu1 %v1600_v0  ;;  %1332 = vmatprep.mubr.msk.f32.mxu1 %vm1601_vm0, %v1600_v0  ;;  %v198_v3 = vand.u32 4294901760, %v195_v2  ;;  %s1791_s7 = scalar_lea.hbm %s1871_s2, %s1272_s30  ;;  %s1146_s8 = sshll.u32 %s185_s21, 4  ;;  %s1147_s8 = int_to_ptr.vmem [resolvable:$true] %s1146_s8 }
  0x3e   : > { %1331 = vmatpush3.msra.mxu1 %v665_v19  ;;  %v742_v22 = vsub.f32 %v187_v1, %v665_v19  ;;  %s1118_s15 = scalar_lea.sflag [#allocation7], %s1730_s28  ;;  %s1483_s16 = scalar_lea.vmem %s1147_s8, 128 }
  0x3f   : > { %1301 = vmatpush3.xpose.msra.mxu0 %v198_v3  ;;  %v275_v4 = vsub.f32 %v195_v2, %v198_v3  ;;  %1335 = vmatprep.subr.mxu1 %v1600_v0  ;;  %p1484_p8 = scmp.ne.s32.totalorder %s1147_s8, %s1483_s16  ;;  %p1880_p9 = scmp.ne.s32.totalorder %s1875_s22, 0 }
  0x40   : > { %1305 = vmatprep.subr.mxu0 %v1600_v0  ;;  %v743_v26 = vand.u32 4294901760, %v742_v22  ;;  %s1602_s18 = smov [#allocation6]  }
  0x41   : > { %v265_v5 = vand.u32 4294901760, %v275_v4  ;;  %p1485_p11 = pnand %p1484_p8, %p1880_p9  ;;  %s1487_s19 = sshll.u32 %s1602_s18, 4  ;;  %s1488_s19 = int_to_ptr.vmem [resolvable:$false] %s1487_s19 }
  0x42   : > { %v744_v29 = vsub.f32 %v742_v22, %v743_v26  ;;  %s1489_s20 = scalar_lea.vmem %s1488_s19, 256  ;;  %p1490_p7 = scmp.lt.s32.totalorder %s1147_s8, %s1488_s19 }
  0x43   : > { %v266_v6 = vsub.f32 %v275_v4, %v265_v5  ;;  %p1486_p0 = pneg %p1485_p11  ;;  %p1491_p13 = scmp.lt.s32.totalorder %s1489_s20, %s1483_s16 }
  0x44   : > { %v745_v32 = vand.u32 4294901760, %v744_v29 }
  0x45   : > { %v267_v7 = vand.u32 4294901760, %v266_v6  ;;  %p1492_p3 = por %p1491_p13, %p1490_p7 }
  0x47   : > { %1303 = vmatmul.mubr.f32.vlgmr.msra.gmra.mrb[0].mxu0 %v267_v7  ;;  %p1493_p6 = pnand %p1492_p3, %p1486_p0 }
  0x48   : > { %1306 = vmatpush3.xpose.msra.mxu0 %v267_v7  ;;  %1307 = vmatprep.mubr.msk.f32.mxu0 %vm1601_vm0, %v1600_v0 }
  0x49   : > { %1310 = vmatprep.subr.mxu0 %v1600_v0 }
  0x4f   : > { %1308 = vmatmul.mubr.f32.vlgmr.msra.gmra.mrb[0].mxu0 %v198_v3 }
  0x50   : > { %1311 = vmatpush3.xpose.msra.mxu0 %v275_v4  ;;  %1312 = vmatprep.mubr.msk.f32.mxu0 %vm1601_vm0, %v1600_v0 }
  0x51   : > { %1315 = vmatprep.subr.mxu0 %v1600_v0 }
  0x57   : > { %1313 = vmatmul.mubr.f32.vlgmr.msra.gmra.mrb[0].mxu0 %v275_v4 }
  0x58   : > { %1316 = vmatpush3.xpose.msra.mxu0 %v198_v3  ;;  %1317 = vmatprep.mubr.msk.f32.mxu0 %vm1601_vm0, %v1600_v0 }
  0x59   : > { %1320 = vmatprep.subr.mxu0 %v1600_v0 }
  0x5f   : > { %1318 = vmatmul.mubr.f32.vlgmr.msra.gmra.mrb[0].mxu0 %v265_v5 }
  0x60   : > { %1321 = vmatpush3.xpose.msra.mxu0 %v265_v5  ;;  %1322 = vmatprep.mubr.msk.f32.mxu0 %vm1601_vm0, %v1600_v0 }
  0x61   : > { %1325 = vmatprep.subr.mxu0 %v1600_v0 }
  0x67   : > { %1323 = vmatmul.mubr.f32.vlgmr.msra.gmra.mrb[0].mxu0 %v198_v3 }
  0x68   : > { %1326 = vmatpush3.xpose.msra.mxu0 %v198_v3  ;;  %1327 = vmatprep.mubr.msk.f32.mxu0 %vm1601_vm0, %v1600_v0 }
  0x6f   : > { %1328 = vmatmul.mubr.f32.vlgmr.msra.gmra.mrb[0].mxu0 %v198_v3 }
 0x142   : > { %v639_v8 = vpop.f32.mrb[0].mxu0 }
 0x143   : > { %v644_v9 = vmul.f32 0.17677669, %v639_v8  ;;  %v1329_v10 = vpop.f32.mrb[1].mxu0  ;;  %vm643_vm2 = vcmp.eq.f32.partialorder %v639_v8, 0.0 }
 0x145   : > { %v645_v11 = vsel %vm643_vm2, -inf, %v644_v9 }
 0x146   : > { %v647_v12 = vsel %vm646_vm3, %v645_v11, -inf }
 0x147   : > { %648 = vmax.xlane.f32.xlu0 %v647_v12 }
 0x1d4   : > { %v649_v13 = vpop.xlane.xlu0 %648 }
 0x1d5   : > { %vm650_vm4 = vcmp.eq.f32.partialorder %v649_v13, -inf }
 0x1d6   : > { %v651_v14 = vsel %vm650_vm4, 0.0, %v649_v13 }
 0x1d7   : > { %v652_v15 = vsub.f32 %v645_v11, %v651_v14 }
 0x1d9   : > { %v653_v16 = vmul.f32 1.442695, %v652_v15 }
 0x1db   : > { %1449 = vpow2.f32 %v653_v16 }
 0x1e5   : > { %v1450_v17 = vpop.eup %1449 }
 0x1e6   : > { %v655_v18 = vsel %vm646_vm3, %v1450_v17, 0.0 }
 0x1e7   : > { %656 = vadd.xlane.f32.xlu0 %v655_v18 }
 0x274   : > { %v657_v20 = vpop.xlane.xlu0 %656 }
 0x275   : > { %v658_v21 = vsel %vm650_vm4, 1.0, %v657_v20 }
 0x276   : > { %1451 = vrcp.f32 %v658_v21 }
 0x280   : > { %v1452_v23 = vpop.eup %1451 }
 0x281   : > { %v660_v24 = vmul.f32 %v1452_v23, %v1450_v17 }
 0x283   : > { %v662_v25 = vsel %vm646_vm3, %v660_v24, 0  ;;  %1110 = vst.msk [vmem:[%s185_s21] sm:$0xff] %vm646_vm3, %v660_v24 }
 0x284   : > { %v730_v27 = vand.u32 4294901760, %v662_v25 }
 0x286   : > { %v731_v28 = vsub.f32 %v662_v25, %v730_v27 }
 0x288   : > { %v732_v30 = vand.u32 4294901760, %v731_v28 }
 0x28a   : > { %v733_v31 = vsub.f32 %v731_v28, %v732_v30 }
 0x28c   : > { %v734_v33 = vand.u32 4294901760, %v733_v31 }
 0x28e   : > { %1333 = vmatmul.mubr.f32.vlgmr.msra.gmra.mrb[0].mxu1 %v734_v33 }
 0x28f   : > { %1336 = vmatpush3.msra.mxu1 %v745_v32  ;;  %1337 = vmatprep.mubr.msk.f32.mxu1 %vm1601_vm0, %v1600_v0 }
 0x290   : > { %1340 = vmatprep.subr.mxu1 %v1600_v0 }
 0x296   : > { %1338 = vmatmul.mubr.f32.vlgmr.msra.gmra.mrb[0].mxu1 %v730_v27 }
 0x297   : > { %1341 = vmatpush3.msra.mxu1 %v742_v22  ;;  %1342 = vmatprep.mubr.msk.f32.mxu1 %vm1601_vm0, %v1600_v0 }
 0x298   : > { %1345 = vmatprep.subr.mxu1 %v1600_v0 }
 0x29e   : > { %1343 = vmatmul.mubr.f32.vlgmr.msra.gmra.mrb[0].mxu1 %v731_v28 }
 0x29f   : > { %1346 = vmatpush3.msra.mxu1 %v665_v19  ;;  %1347 = vmatprep.mubr.msk.f32.mxu1 %vm1601_vm0, %v1600_v0 }
 0x2a0   : > { %1350 = vmatprep.subr.mxu1 %v1600_v0 }
 0x2a6   : > { %1348 = vmatmul.mubr.f32.vlgmr.msra.gmra.mrb[0].mxu1 %v732_v30 }
 0x2a7   : > { %1351 = vmatpush3.msra.mxu1 %v743_v26  ;;  %1352 = vmatprep.mubr.msk.f32.mxu1 %vm1601_vm0, %v1600_v0 }
 0x2a8   : > { %1355 = vmatprep.subr.mxu1 %v1600_v0 }
 0x2ae   : > { %1353 = vmatmul.mubr.f32.vlgmr.msra.gmra.mrb[0].mxu1 %v730_v27 }
 0x2af   : > { %1356 = vmatpush3.msra.mxu1 %v665_v19  ;;  %1357 = vmatprep.mubr.msk.f32.mxu1 %vm1601_vm0, %v1600_v0 }
 0x2b6   : > { %1358 = vmatmul.mubr.f32.vlgmr.msra.gmra.mrb[0].mxu1 %v730_v27 }
 0x2b7   : > { %1496 = shalt.err (!%p1493_p6)
}
 0x2b8   : > { %s1497_s25 = scalar_lea.hbm %s1791_s7, 128  ;;  %s1501_s3 = scalar_lea.hbm %s1871_s2, 256 }
 0x2b9   : > { %p1498_p4 = scmp.ne.s32.totalorder %s1791_s7, %s1497_s25  ;;  %p1502_p1 = scmp.lt.u32.totalorder %s1791_s7, %s1871_s2 }
 0x2ba   : > { %p1503_p2 = scmp.lt.u32.totalorder %s1501_s3, %s1497_s25  ;;  %p1505_p8 = scmp.lt.u32.totalorder %s1497_s25, %s1791_s7 }
 0x2bb   : > { %p1499_p10 = pnand %p1498_p4, %p1880_p9 }
 0x2bc   : > { %p1504_p5 = por %p1503_p2, %p1502_p1 }
 0x2bd   : > { %p1500_p12 = pneg %p1499_p10 }
 0x2be   : > { %p1506_p11 = por %p1505_p8, %p1504_p5 }
 0x2c0   : > { %p1507_p0 = pnand %p1506_p11, %p1500_p12 }
 0x2c2   : > { %1510 = shalt.err (!%p1507_p0)
}
 0x2c3   : > { %1383 = dma.vmem_to_hbm [thread:$0]  (%p1880_p9), %s1147_s8, 128, %s1791_s7, %s1118_s15  }
 0x2c4   : > { %s178_s4 = scalar_lea.vmem [#allocation5], %s1733_s29  ;;  %s1819_s19 = scalar_lea.hbm %s1870_s1, %s1272_s30 }
 0x2c5   : > { %s1132_s6 = sshll.u32 %s178_s4, 4  ;;  %s1113_s20 = scalar_lea.sflag [#allocation4], %s1730_s28  ;;  %s1821_s6 = int_to_ptr.vmem [resolvable:$true] %s1132_s6 }
 0x2c6   : > { %s1511_s25 = scalar_lea.vmem %s1821_s6, 128  ;;  %s1603_s12 = smov [#allocation5]  }
 0x2c7   : > { %p1512_p7 = scmp.ne.s32.totalorder %s1821_s6, %s1511_s25  ;;  %s1515_s29 = sshll.u32 %s1603_s12, 4  ;;  %s1516_s29 = int_to_ptr.vmem [resolvable:$false] %s1515_s29 }
 0x2c8   : > { %s1517_s30 = scalar_lea.vmem %s1516_s29, 256  ;;  %p1518_p6 = scmp.lt.s32.totalorder %s1821_s6, %s1516_s29 }
 0x2c9   : > { %p1513_p13 = pnand %p1512_p7, %p1880_p9  ;;  %p1519_p4 = scmp.lt.s32.totalorder %s1517_s30, %s1511_s25 }
 0x2cb   : > { %p1514_p3 = pneg %p1513_p13  ;;  %p1520_p10 = por %p1519_p4, %p1518_p6 }
 0x2cd   : > { %p1521_p12 = pnand %p1520_p10, %p1514_p3 }
 0x389   : > { %v1106_v34 = vpop.f32.mrb[0].mxu1 }
 0x38a   : > { %1111 = vst.msk [vmem:[%s178_s4] sm:$0xff] %vm190_vm1, %v1106_v34  ;;  %v1359_v35 = vpop.f32.mrb[1].mxu1 }
 0x38b   : > { %1524 = shalt.err (!%p1521_p12)
}
 0x38c   : > { %s1525_s28 = scalar_lea.hbm %s1819_s19, 128  ;;  %s1529_s15 = scalar_lea.hbm %s1870_s1, 256 }
 0x38d   : > { %p1526_p1 = scmp.ne.s32.totalorder %s1819_s19, %s1525_s28  ;;  %p1530_p8 = scmp.lt.u32.totalorder %s1819_s19, %s1870_s1 }
 0x38e   : > { %p1531_p11 = scmp.lt.u32.totalorder %s1529_s15, %s1525_s28  ;;  %p1533_p7 = scmp.lt.u32.totalorder %s1525_s28, %s1819_s19 }
 0x38f   : > { %p1527_p2 = pnand %p1526_p1, %p1880_p9 }
 0x390   : > { %p1532_p0 = por %p1531_p11, %p1530_p8 }
 0x391   : > { %p1528_p5 = pneg %p1527_p2 }
 0x392   : > { %p1534_p13 = por %p1533_p7, %p1532_p0 }
 0x394   : > { %p1535_p3 = pnand %p1534_p13, %p1528_p5 }
 0x396   : > { %1538 = shalt.err (!%p1535_p3)
}
 0x397   : > { %1382 = dma.vmem_to_hbm [thread:$0]  (%p1880_p9), %s1821_s6, 128, %s1819_s19, %s1113_s20  }
 0x398 PF: > { %s1158_s3 = sand.u32 1, %s1577_s9   ;;  %p1881_p6 = scmp.ne.s32.totalorder %s1876_s24, 0 }
 0x399   : > { %p1882_p4 = scmp.ge.s32.totalorder %s1597_s14, 2  ;;  %s1159_s5 = scalar_lea.sflag [#allocation4], %s1158_s3 }
 0x39b   : > { %p1391_p10 = pnand %p1882_p4, %p1881_p6 }
 0x39d   : > { %1568 = dma.done.wait (!%p1391_p10), %s1159_s5, 128  }
 0x39e   : > { %1570 = vsyncadd (!%p1391_p10), %s1159_s5, 4294967168  ;;  %s1168_s21 = scalar_lea.sflag [#allocation7], %s1158_s3 }
 0x39f   : > { %1572 = dma.done.wait (!%p1391_p10), %s1168_s21, 128  }
 0x3a0   : > { %1574 = vsyncadd (!%p1391_p10), %s1168_s21, 4294967168  ;;  %s22_s14 = sadd.s32 1, %s1597_s14   ;;  %s1883_s9 = smov %s1581_s10 }
 0x3a1   : > { %p19_p12 = scmp.ge.s32.totalorder %s22_s14, 4   ;;  %s1884_s10 = smov %s1585_s11 }
 0x3a2   : > { %s1885_s11 = smov %s1675_s23  ;;  %s1886_s12 = smov %s1593_s13 }
 0x3a3   : > { %s1887_s13 = smov %s1889_s17  ;;  %21 = sbr.rel (!%p19_p12) target bundleno = 8 (0x8), region = 87 }
 0x3aa   :  { %1173 = vsyncpa [#allocation3], 1 }
 0x3ab   :  { %1175 = vsyncpa [#allocation3 + $0x1], 1 }
 0x3ac   :  { %1176 = vsyncpa [#allocation4], 1 }
 0x3ad   :  { %1178 = vsyncpa [#allocation4 + $0x1], 1 }
 0x3ae   :  { %1179 = vsyncpa [#allocation7], 1 }
 0x3af   :  { %1181 = vsyncpa [#allocation7 + $0x1], 1 }

</bundles_post_ra>
